<compile_context>
chip_gen: v5e
topology: v5e:2x2
jax: 0.10.0
libtpu: 0.0.40
codegen_flags: <defaults>
</compile_context>

<pallas_src>
import math

import jax
import jax.numpy as jnp
from jax.experimental import pallas as pl
from jax.experimental.pallas import tpu as pltpu

GAMMA = 1.0          # FocalLoss(gamma=1.0, ...)
ALPHA = (0.2, 0.8)   # alpha=0.2 -> torch.Tensor([alpha, 1 - alpha])
SMOOTH = 1.0         # JILoss default smooth

_LANE = 128
_MAX_R_TILE = 512    # multiple of 8; 512*128 = 65536 pixels per grid step


def _round_up(x, m):
    return ((x + m - 1) // m) * m


def _ji_focal_stats_kernel(x_ref, y_ref, out_ref):
    # x_ref:   (1, C, T, 128) f32 logits                    (VMEM tile)
    # y_ref:   (1, 1, T, 128) i32 labels in {0..C-1}, -1 = padded pixel
    # out_ref: (1, 3*C-1, 8, 128) f32 resident per-batch accumulator:
    #          slabs [0, C)        : tp_c
    #          slabs [C, 2C-1)     : sum-of-probs ps_c      (c < C-1)
    #          slabs [2C-1, 3C-2)  : one-hot count cnt_c    (c < C-1)
    #          slab  3C-2          : focal partial sum
    _, C, T, L = x_ref.shape
    G = T // 8

    @pl.when(pl.program_id(1) == 0)
    def _():
        out_ref[...] = jnp.zeros_like(out_ref)

    xc = [x_ref[0, c] for c in range(C)]            # C x (T, L) f32
    yb = y_ref[0, 0]                                # (T, L) i32

    # channel max via pairwise VPU maximum (tiny C unrolled; no XLU reduce)
    x_max = xc[0]
    for c in range(1, C):
        x_max = jnp.maximum(x_max, xc[c])

    ex = [jnp.exp(xc[c] - x_max) for c in range(C)]
    denom = ex[0]
    for c in range(1, C):
        denom = denom + ex[c]
    # TODO(synk): pl.reciprocal(denom, approx=True) would move this to the idle
    # EUP slot; kept exact pending validation of the ~2^-12 relative error.
    inv_denom = pl.reciprocal(denom)
    log_denom = jnp.log(denom)
    probs = [ex[c] * inv_denom for c in range(C)]

    # validity mask (0 on padded pixels) and one-hot masks; the last channel is
    # derived as valid - sum(others) so it needs no compare and is 0 on padding.
    valid = (yb >= 0).astype(jnp.float32)
    oh = [(yb == c).astype(jnp.float32) for c in range(C - 1)]
    oh_head = oh[0]
    for c in range(1, C - 1):
        oh_head = oh_head + oh[c]
    oh.append(valid - oh_head)

    def slab(v):
        # (T, L) -> (8, L): full-vreg VALU adds only; final 8-row + lane
        # reduction happens in the XLA epilogue.
        return jnp.sum(v.reshape(G, 8, L), axis=0)

    idx = 0
    for c in range(C):                               # tp_c
        out_ref[0, idx] += slab(probs[c] * oh[c])
        idx += 1
    for c in range(C - 1):                           # ps_c (masked; last channel
        out_ref[0, idx] += slab(probs[c] * valid)    #  recovered in epilogue)
        idx += 1
    for c in range(C - 1):                           # cnt_c (last recovered)
        out_ref[0, idx] += slab(oh[c])
        idx += 1

    # ---- Focal: gather target logit / prob via one-hot selects ----
    x_t = oh[0] * xc[0]
    p_t = oh[0] * probs[0]                           # pt = softmax prob of target
    for c in range(1, C):
        x_t = x_t + oh[c] * xc[c]
        p_t = p_t + oh[c] * probs[c]
    logpt = x_t - x_max - log_denom

    # alpha.gather(0, target) with alpha=[0.2, 0.8]; exact for labels {0,1}
    # (the only domain the 2-entry-alpha torch module supports); labels >= 1
    # get ALPHA[1]. Zero on padded pixels, so no extra focal mask is needed.
    at = ALPHA[1] * valid - (ALPHA[1] - ALPHA[0]) * oh[0]
    if GAMMA == 1.0:
        mod = 1.0 - p_t
    else:
        mod = (1.0 - p_t) ** GAMMA
    out_ref[0, idx] += slab(-mod * (at * logpt))


@jax.jit
def ji_and_focal_loss(net_output, target):
    """net_output: (B, C, *spatial) float logits (PyTorch NC... convention)
    target:     (B, 1, *spatial) (or (B, *spatial)) integer label map in {0,1}."""
    B, C = net_output.shape[0], net_output.shape[1]
    P = int(math.prod(net_output.shape[2:]))
    L = _LANE

    # ---- lane-dense spatial layout with masked padding ----
    R_raw = pl.cdiv(P, L)
    if R_raw <= _MAX_R_TILE:
        r_tile = _round_up(R_raw, 8)
        R = r_tile
    else:
        r_tile = _MAX_R_TILE
        R = _round_up(R_raw, r_tile)
    pad = R * L - P

    # TODO(synk): logits could be shipped as bf16 and labels as int8 to cut HBM
    # bytes on v5e/v6e (with r_tile % 16 / % 32); kept f32/int32 for accuracy.
    x_flat = net_output.reshape(B, C, P).astype(jnp.float32)
    y_flat = target.reshape(B, 1, P).astype(jnp.int32)
    if pad:
        x_flat = jnp.pad(x_flat, ((0, 0), (0, 0), (0, pad)))
        y_flat = jnp.pad(y_flat, ((0, 0), (0, 0), (0, pad)), constant_values=-1)
    x = x_flat.reshape(B, C, R, L)
    y = y_flat.reshape(B, 1, R, L)

    S = 3 * C - 1                      # stat slabs per batch
    num_r = R // r_tile

    # VMEM budget: double-buffered input blocks + resident stat slabs + headroom
    # for materialized elementwise temporaries. Kept well under v7x's 64 MiB.
    blk = r_tile * L * 4
    budget = 2 * (C + 1) * blk + 2 * S * 8 * L * 4 + (6 * C + 16) * blk + (1 << 20)
    vmem_limit = int(min(max(budget, 32 * 1024 * 1024), 48 * 1024 * 1024))

    stats4d = pl.pallas_call(
        _ji_focal_stats_kernel,
        out_shape=jax.ShapeDtypeStruct((B, S, 8, L), jnp.float32),
        grid=(B, num_r),
        in_specs=[
            pl.BlockSpec((1, C, r_tile, L), lambda b, r: (b, 0, r, 0)),
            pl.BlockSpec((1, 1, r_tile, L), lambda b, r: (b, 0, r, 0)),
        ],
        out_specs=pl.BlockSpec((1, S, 8, L), lambda b, r: (b, 0, 0, 0)),
        compiler_params=pltpu.CompilerParams(
            dimension_semantics=("parallel", "arbitrary"),
            vmem_limit_bytes=vmem_limit),
    )(x, y)

    # ---- tiny XLA epilogue: slab/lane reduce + dc / means / combine ----
    stats = jnp.sum(stats4d, axis=(2, 3))            # (B, S)
    tp = stats[:, 0:C]                               # (B, C)
    ps_head = stats[:, C:2 * C - 1]                  # (B, C-1)
    cnt_head = stats[:, 2 * C - 1:3 * C - 2]         # (B, C-1)
    focal = jnp.sum(stats[:, 3 * C - 2])             # scalar

    p_valid = jnp.float32(P)                         # padded pixels are masked out
    ps_last = p_valid - jnp.sum(ps_head, axis=1, keepdims=True)
    cnt_last = p_valid - jnp.sum(cnt_head, axis=1, keepdims=True)
    ps = jnp.concatenate([ps_head, ps_last], axis=1)
    cnt = jnp.concatenate([cnt_head, cnt_last], axis=1)

    fp = ps - tp
    fn = cnt - tp
    dc = (tp + SMOOTH) / (tp + fp + fn + SMOOTH)
    ji_loss = -jnp.mean(dc)
    return ji_loss + 0.1 * focal


def _reference_loss(net_output, target):
    """Pure-JAX reference mirroring the PyTorch forward, for validation."""
    B, C = net_output.shape[0], net_output.shape[1]
    # JI part
    p = jax.nn.softmax(net_output, axis=1)
    onehot = jax.nn.one_hot(target[:, 0], C, axis=1, dtype=jnp.float32)
    sp_axes = tuple(range(2, net_output.ndim))
    tp = jnp.sum(p * onehot, axis=sp_axes)
    fp = jnp.sum(p * (1.0 - onehot), axis=sp_axes)
    fn = jnp.sum((1.0 - p) * onehot, axis=sp_axes)
    dc = (tp + SMOOTH) / (tp + fp + fn + SMOOTH)
    ji = -jnp.mean(dc)
    # Focal part
    logits = net_output.reshape(B, C, -1).transpose(0, 2, 1).reshape(-1, C)
    t = target.reshape(-1)
    logp = jax.nn.log_softmax(logits, axis=1)
    logpt = jnp.take_along_axis(logp, t[:, None], axis=1)[:, 0]
    pt = jnp.exp(logpt)
    alpha = jnp.array(ALPHA, dtype=jnp.float32)
    at = alpha[t]
    focal = jnp.sum(-((1.0 - pt) ** GAMMA) * (at * logpt))
    return ji + 0.1 * focal


if __name__ == "__main__":
    key = jax.random.PRNGKey(0)
    k1, k2 = jax.random.split(key)
    B, C, H, W = 2, 2, 16, 16
    net_output = jax.random.normal(k1, (B, C, H, W), dtype=jnp.float32)
    target = jax.random.randint(k2, (B, 1, H, W), 0, C, dtype=jnp.int32)

    loss = ji_and_focal_loss(net_output, target)
    loss = jax.block_until_ready(loss)

    ref = _reference_loss(net_output, target)
    assert jnp.allclose(loss, ref, rtol=1e-4, atol=1e-4), (loss, ref)
    print("KERNEL_OK")
</pallas_src>

<mosaic_0001>
module attributes {stable_mosaic.version = 11 : i64} {
  func.func @_ji_focal_stats_kernel(%arg0: i32, %arg1: i32, %arg2: memref<1x2x8x128xf32, #tpu.memory_space<vmem>>, %arg3: memref<1x1x8x128xi32, #tpu.memory_space<vmem>>, %arg4: memref<1x5x8x128xf32, #tpu.memory_space<vmem>>) attributes {dimension_semantics = [#tpu.dimension_semantics<parallel>, #tpu.dimension_semantics<arbitrary>], iteration_bounds = array<i64: 2, 1>, scalar_prefetch = 0 : i64, scratch_operands = 0 : i64, tpu.core_type = #tpu.core_type<tc>, window_params = [{transform_indices = @transform_0, window_bounds = array<i64: 1, 2, 8, 128>}, {transform_indices = @transform_1, window_bounds = array<i64: 1, 1, 8, 128>}, {transform_indices = @transform_2, window_bounds = array<i64: 1, 5, 8, 128>}]} {
    %c0_i32 = arith.constant 0 : i32
    %0 = arith.cmpi eq, %arg1, %c0_i32 : i32
    %1 = arith.extui %0 : i1 to i32
    %c0_i32_0 = arith.constant 0 : i32
    %2 = arith.cmpi ne, %1, %c0_i32_0 : i32
    scf.if %2 {
      %cst_58 = arith.constant 0.000000e+00 : f32
      %90 = vector.broadcast %cst_58 : f32 to vector<1x5x8x128xf32>
      %c0_59 = arith.constant 0 : index
      %c0_60 = arith.constant 0 : index
      %c0_61 = arith.constant 0 : index
      %c0_62 = arith.constant 0 : index
      %91 = vector.load %arg4[%c0_59, %c0_60, %c0_61, %c0_62] : memref<1x5x8x128xf32, #tpu.memory_space<vmem>>, vector<1x5x8x128xf32>
      tpu.vector_store %arg4[%c0_59, %c0_60, %c0_61, %c0_62], %90 {strides = array<i32>} : memref<1x5x8x128xf32, #tpu.memory_space<vmem>>, vector<1x5x8x128xf32>,
    } else {
    }
    %c0 = arith.constant 0 : index
    %c0_1 = arith.constant 0 : index
    %c0_2 = arith.constant 0 : index
    %c0_3 = arith.constant 0 : index
    %3 = vector.load %arg2[%c0, %c0_1, %c0_2, %c0_3] : memref<1x2x8x128xf32, #tpu.memory_space<vmem>>, vector<1x1x8x128xf32>
    %4 = vector.shape_cast %3 : vector<1x1x8x128xf32> to vector<8x128xf32>
    %c0_4 = arith.constant 0 : index
    %c1 = arith.constant 1 : index
    %c0_5 = arith.constant 0 : index
    %c0_6 = arith.constant 0 : index
    %5 = vector.load %arg2[%c0_4, %c1, %c0_5, %c0_6] : memref<1x2x8x128xf32, #tpu.memory_space<vmem>>, vector<1x1x8x128xf32>
    %6 = vector.shape_cast %5 : vector<1x1x8x128xf32> to vector<8x128xf32>
    %c0_7 = arith.constant 0 : index
    %c0_8 = arith.constant 0 : index
    %c0_9 = arith.constant 0 : index
    %c0_10 = arith.constant 0 : index
    %7 = vector.load %arg3[%c0_7, %c0_8, %c0_9, %c0_10] : memref<1x1x8x128xi32, #tpu.memory_space<vmem>>, vector<1x1x8x128xi32>
    %8 = vector.shape_cast %7 : vector<1x1x8x128xi32> to vector<8x128xi32>
    %9 = arith.maximumf %4, %6 : vector<8x128xf32>
    %10 = arith.subf %4, %9 : vector<8x128xf32>
    %11 = math.exp %10 : vector<8x128xf32>
    %12 = arith.subf %6, %9 : vector<8x128xf32>
    %13 = math.exp %12 : vector<8x128xf32>
    %14 = arith.addf %11, %13 : vector<8x128xf32>
    %15 = tpu.reciprocal %14 : vector<8x128xf32> -> vector<8x128xf32>
    %16 = math.log %14 : vector<8x128xf32>
    %17 = arith.mulf %11, %15 : vector<8x128xf32>
    %18 = arith.mulf %13, %15 : vector<8x128xf32>
    %c0_i32_11 = arith.constant 0 : i32
    %19 = vector.broadcast %c0_i32_11 : i32 to vector<8x128xi32>
    %20 = arith.cmpi sge, %8, %19 : vector<8x128xi32>
    %21 = arith.extui %20 : vector<8x128xi1> to vector<8x128xi32>
    %22 = arith.sitofp %21 : vector<8x128xi32> to vector<8x128xf32>
    %c0_i32_12 = arith.constant 0 : i32
    %23 = vector.broadcast %c0_i32_12 : i32 to vector<8x128xi32>
    %24 = arith.cmpi eq, %8, %23 : vector<8x128xi32>
    %25 = arith.extui %24 : vector<8x128xi1> to vector<8x128xi32>
    %26 = arith.sitofp %25 : vector<8x128xi32> to vector<8x128xf32>
    %27 = arith.subf %22, %26 : vector<8x128xf32>
    %c0_13 = arith.constant 0 : index
    %c0_14 = arith.constant 0 : index
    %c0_15 = arith.constant 0 : index
    %c0_16 = arith.constant 0 : index
    %28 = vector.load %arg4[%c0_13, %c0_14, %c0_15, %c0_16] : memref<1x5x8x128xf32, #tpu.memory_space<vmem>>, vector<1x1x8x128xf32>
    %29 = vector.shape_cast %28 : vector<1x1x8x128xf32> to vector<8x128xf32>
    %30 = arith.mulf %17, %26 : vector<8x128xf32>
    %31 = vector.shape_cast %30 : vector<8x128xf32> to vector<1x8x128xf32>
    %cst = arith.constant dense<0.000000e+00> : vector<8x128xf32>
    %32 = vector.multi_reduction <add>, %31, %cst [0] : vector<1x8x128xf32> to vector<8x128xf32>
    %33 = arith.addf %29, %32 : vector<8x128xf32>
    %c0_17 = arith.constant 0 : index
    %c0_18 = arith.constant 0 : index
    %c0_19 = arith.constant 0 : index
    %c0_20 = arith.constant 0 : index
    %34 = vector.load %arg4[%c0_17, %c0_18, %c0_19, %c0_20] : memref<1x5x8x128xf32, #tpu.memory_space<vmem>>, vector<1x1x8x128xf32>
    %35 = vector.shape_cast %34 : vector<1x1x8x128xf32> to vector<8x128xf32>
    %36 = vector.shape_cast %33 : vector<8x128xf32> to vector<1x1x8x128xf32>
    tpu.vector_store %arg4[%c0_17, %c0_18, %c0_19, %c0_20], %36 {strides = array<i32>} : memref<1x5x8x128xf32, #tpu.memory_space<vmem>>, vector<1x1x8x128xf32>,
    %c0_21 = arith.constant 0 : index
    %c1_22 = arith.constant 1 : index
    %c0_23 = arith.constant 0 : index
    %c0_24 = arith.constant 0 : index
    %37 = vector.load %arg4[%c0_21, %c1_22, %c0_23, %c0_24] : memref<1x5x8x128xf32, #tpu.memory_space<vmem>>, vector<1x1x8x128xf32>
    %38 = vector.shape_cast %37 : vector<1x1x8x128xf32> to vector<8x128xf32>
    %39 = arith.mulf %18, %27 : vector<8x128xf32>
    %40 = vector.shape_cast %39 : vector<8x128xf32> to vector<1x8x128xf32>
    %cst_25 = arith.constant dense<0.000000e+00> : vector<8x128xf32>
    %41 = vector.multi_reduction <add>, %40, %cst_25 [0] : vector<1x8x128xf32> to vector<8x128xf32>
    %42 = arith.addf %38, %41 : vector<8x128xf32>
    %c0_26 = arith.constant 0 : index
    %c1_27 = arith.constant 1 : index
    %c0_28 = arith.constant 0 : index
    %c0_29 = arith.constant 0 : index
    %43 = vector.load %arg4[%c0_26, %c1_27, %c0_28, %c0_29] : memref<1x5x8x128xf32, #tpu.memory_space<vmem>>, vector<1x1x8x128xf32>
    %44 = vector.shape_cast %43 : vector<1x1x8x128xf32> to vector<8x128xf32>
    %45 = vector.shape_cast %42 : vector<8x128xf32> to vector<1x1x8x128xf32>
    tpu.vector_store %arg4[%c0_26, %c1_27, %c0_28, %c0_29], %45 {strides = array<i32>} : memref<1x5x8x128xf32, #tpu.memory_space<vmem>>, vector<1x1x8x128xf32>,
    %c0_30 = arith.constant 0 : index
    %c2 = arith.constant 2 : index
    %c0_31 = arith.constant 0 : index
    %c0_32 = arith.constant 0 : index
    %46 = vector.load %arg4[%c0_30, %c2, %c0_31, %c0_32] : memref<1x5x8x128xf32, #tpu.memory_space<vmem>>, vector<1x1x8x128xf32>
    %47 = vector.shape_cast %46 : vector<1x1x8x128xf32> to vector<8x128xf32>
    %48 = arith.mulf %17, %22 : vector<8x128xf32>
    %49 = vector.shape_cast %48 : vector<8x128xf32> to vector<1x8x128xf32>
    %cst_33 = arith.constant dense<0.000000e+00> : vector<8x128xf32>
    %50 = vector.multi_reduction <add>, %49, %cst_33 [0] : vector<1x8x128xf32> to vector<8x128xf32>
    %51 = arith.addf %47, %50 : vector<8x128xf32>
    %c0_34 = arith.constant 0 : index
    %c2_35 = arith.constant 2 : index
    %c0_36 = arith.constant 0 : index
    %c0_37 = arith.constant 0 : index
    %52 = vector.load %arg4[%c0_34, %c2_35, %c0_36, %c0_37] : memref<1x5x8x128xf32, #tpu.memory_space<vmem>>, vector<1x1x8x128xf32>
    %53 = vector.shape_cast %52 : vector<1x1x8x128xf32> to vector<8x128xf32>
    %54 = vector.shape_cast %51 : vector<8x128xf32> to vector<1x1x8x128xf32>
    tpu.vector_store %arg4[%c0_34, %c2_35, %c0_36, %c0_37], %54 {strides = array<i32>} : memref<1x5x8x128xf32, #tpu.memory_space<vmem>>, vector<1x1x8x128xf32>,
    %c0_38 = arith.constant 0 : index
    %c3 = arith.constant 3 : index
    %c0_39 = arith.constant 0 : index
    %c0_40 = arith.constant 0 : index
    %55 = vector.load %arg4[%c0_38, %c3, %c0_39, %c0_40] : memref<1x5x8x128xf32, #tpu.memory_space<vmem>>, vector<1x1x8x128xf32>
    %56 = vector.shape_cast %55 : vector<1x1x8x128xf32> to vector<8x128xf32>
    %57 = vector.shape_cast %26 : vector<8x128xf32> to vector<1x8x128xf32>
    %cst_41 = arith.constant dense<0.000000e+00> : vector<8x128xf32>
    %58 = vector.multi_reduction <add>, %57, %cst_41 [0] : vector<1x8x128xf32> to vector<8x128xf32>
    %59 = arith.addf %56, %58 : vector<8x128xf32>
    %c0_42 = arith.constant 0 : index
    %c3_43 = arith.constant 3 : index
    %c0_44 = arith.constant 0 : index
    %c0_45 = arith.constant 0 : index
    %60 = vector.load %arg4[%c0_42, %c3_43, %c0_44, %c0_45] : memref<1x5x8x128xf32, #tpu.memory_space<vmem>>, vector<1x1x8x128xf32>
    %61 = vector.shape_cast %60 : vector<1x1x8x128xf32> to vector<8x128xf32>
    %62 = vector.shape_cast %59 : vector<8x128xf32> to vector<1x1x8x128xf32>
    tpu.vector_store %arg4[%c0_42, %c3_43, %c0_44, %c0_45], %62 {strides = array<i32>} : memref<1x5x8x128xf32, #tpu.memory_space<vmem>>, vector<1x1x8x128xf32>,
    %63 = arith.mulf %26, %4 : vector<8x128xf32>
    %64 = arith.mulf %26, %17 : vector<8x128xf32>
    %65 = arith.mulf %27, %6 : vector<8x128xf32>
    %66 = arith.addf %63, %65 : vector<8x128xf32>
    %67 = arith.mulf %27, %18 : vector<8x128xf32>
    %68 = arith.addf %64, %67 : vector<8x128xf32>
    %69 = arith.subf %66, %9 : vector<8x128xf32>
    %70 = arith.subf %69, %16 : vector<8x128xf32>
    %cst_46 = arith.constant 8.000000e-01 : f32
    %71 = vector.broadcast %cst_46 : f32 to vector<8x128xf32>
    %72 = arith.mulf %71, %22 : vector<8x128xf32>
    %cst_47 = arith.constant 6.000000e-01 : f32
    %73 = vector.broadcast %cst_47 : f32 to vector<8x128xf32>
    %74 = arith.mulf %73, %26 : vector<8x128xf32>
    %75 = arith.subf %72, %74 : vector<8x128xf32>
    %cst_48 = arith.constant 1.000000e+00 : f32
    %76 = vector.broadcast %cst_48 : f32 to vector<8x128xf32>
    %77 = arith.subf %76, %68 : vector<8x128xf32>
    %c0_49 = arith.constant 0 : index
    %c4 = arith.constant 4 : index
    %c0_50 = arith.constant 0 : index
    %c0_51 = arith.constant 0 : index
    %78 = vector.load %arg4[%c0_49, %c4, %c0_50, %c0_51] : memref<1x5x8x128xf32, #tpu.memory_space<vmem>>, vector<1x1x8x128xf32>
    %79 = vector.shape_cast %78 : vector<1x1x8x128xf32> to vector<8x128xf32>
    %cst_52 = arith.constant 0.000000e+00 : f32
    %80 = vector.broadcast %cst_52 : f32 to vector<8x128xf32>
    %81 = arith.subf %80, %77 : vector<8x128xf32>
    %82 = arith.mulf %75, %70 : vector<8x128xf32>
    %83 = arith.mulf %81, %82 : vector<8x128xf32>
    %84 = vector.shape_cast %83 : vector<8x128xf32> to vector<1x8x128xf32>
    %cst_53 = arith.constant dense<0.000000e+00> : vector<8x128xf32>
    %85 = vector.multi_reduction <add>, %84, %cst_53 [0] : vector<1x8x128xf32> to vector<8x128xf32>
    %86 = arith.addf %79, %85 : vector<8x128xf32>
    %c0_54 = arith.constant 0 : index
    %c4_55 = arith.constant 4 : index
    %c0_56 = arith.constant 0 : index
    %c0_57 = arith.constant 0 : index
    %87 = vector.load %arg4[%c0_54, %c4_55, %c0_56, %c0_57] : memref<1x5x8x128xf32, #tpu.memory_space<vmem>>, vector<1x1x8x128xf32>
    %88 = vector.shape_cast %87 : vector<1x1x8x128xf32> to vector<8x128xf32>
    %89 = vector.shape_cast %86 : vector<8x128xf32> to vector<1x1x8x128xf32>
    tpu.vector_store %arg4[%c0_54, %c4_55, %c0_56, %c0_57], %89 {strides = array<i32>} : memref<1x5x8x128xf32, #tpu.memory_space<vmem>>, vector<1x1x8x128xf32>,
    return
  }
  func.func @transform_0(%arg0: i32, %arg1: i32) -> (i32, i32, i32, i32) {
    %c0_i32 = arith.constant 0 : i32
    %c0_i32_0 = arith.constant 0 : i32
    %c0_i32_1 = arith.constant 0 : i32
    return %arg0, %c0_i32, %arg1, %c0_i32_0 : i32, i32, i32, i32
  }
  func.func @transform_1(%arg0: i32, %arg1: i32) -> (i32, i32, i32, i32) {
    %c0_i32 = arith.constant 0 : i32
    %c0_i32_0 = arith.constant 0 : i32
    %c0_i32_1 = arith.constant 0 : i32
    return %arg0, %c0_i32, %arg1, %c0_i32_0 : i32, i32, i32, i32
  }
  func.func @transform_2(%arg0: i32, %arg1: i32) -> (i32, i32, i32, i32) {
    %c0_i32 = arith.constant 0 : i32
    %c0_i32_0 = arith.constant 0 : i32
    %c0_i32_1 = arith.constant 0 : i32
    %c0_i32_2 = arith.constant 0 : i32
    return %arg0, %c0_i32, %c0_i32_0, %c0_i32_1 : i32, i32, i32, i32
  }
}

</mosaic_0001>

<bundles_post_ra>
// kernel: ji_and_focal_loss.1
= control target key start
LH: loop header
LB: loop body
LE: loop exit
PB: predicated region body
PF: predicated region fallthrough
CT: control target
= control target key end

     0   :  { %s462_s9 = smov 0   ;;  %s464_s10 = smov 0   ;;  %s505_s0 = inlined_call_operand.vmem [shape: f32[2,2,8,128], index: 0, kind: input, shape index: {}]   ;;  %s506_s1 = inlined_call_operand.vmem [shape: s32[2,1,8,128], index: 1, kind: input, shape index: {}]   ;;  %s507_s2 = inlined_call_operand.vmem [shape: f32[2,5,8,128], index: 2, kind: output, shape index: {}]  }
   0x1   :  { %s466_s11 = smov 0  }
   0x2 LB: > { %s24_s12 = sadd.s32 1, %s440_s10  ;;  %p369_p0 = scmp.ge.s32.totalorder %s444_s11, 1  ;;  %s444_s11 = sphi %s466_s11, %s12_s11   ;;  %s440_s10 = sphi %s464_s10, %s509_s10   ;;  %s436_s9 = sphi %s462_s9, %s508_s9  }
   0x3   : > { %p26_p1 = scmp.ge.s32.totalorder %s24_s12, 2  ;;  %p143_p2 = scmp.lt.s32.totalorder %s444_s11, 3 }
   0x5   : > { %s511_s12 = smov (%p26_p1, %s24_s12), 0  ;;  %p144_p3 = pnand %p369_p0, %p143_p2 }
   0x6   : > { %p175_p4 = scmp.lt.s32.totalorder (!%p144_p3), %s436_s9, 1 }
   0x7   : > { %147 = sbr.rel (%p144_p3) target bundleno = 62 (0x3e), region = 28 }
   0xc   : > { %s513_s9 = smov (!%p175_p4, %s436_s9), 1  ;;  %v446_v8 = vmov 0.0  }
   0xd   : > { %s387_s13 = sshll.u32 %s513_s9, 4  ;;  %s372_s17 = sshll.u32 %s513_s9, 3 }
   0xe   : > { %s182_s16 = scalar_lea.vmem %s505_s0, %s387_s13  ;;  %s189_s20 = scalar_lea.vmem %s506_s1, %s372_s17 }
   0xf   : > { %v204_v0 = vld [vmem:[%s182_s16] sm:$0xff]  ;;  %v374_v1 = vld [vmem:[%s182_s16 + $0x8] sm:$0xff]  ;;  %s388_s21 = smul.u32 40, %s513_s9 }
  0x10   : > { %v208_v2 = vmax.f32 %v204_v0, %v374_v1  ;;  %v207_v3 = vld [vmem:[%s189_s20] sm:$0xff] }
  0x11   : > { %vm237_vm0 = vcmp.eq.s32.totalorder %v207_v3, 0  ;;  %s489_s24 = scalar_lea.vmem %s507_s2, %s388_s21  ;;  %vm234_vm1 = vcmp.ge.s32.totalorder %v207_v3, 0 }
  0x12   : > { %v209_v4 = vsub.f32 %v204_v0, %v208_v2  ;;  %v212_v5 = vsub.f32 %v374_v1, %v208_v2  ;;  %v376_v9 = vsel %vm237_vm0, 1.0, %v446_v8  ;;  %v375_v13 = vsel %vm234_vm1, 1.0, %v446_v8 }
  0x13   : > { %382 = vst [vmem:[%s489_s24 + $0x18] sm:$0xff] %v376_v9  ;;  %v240_v14 = vsub.f32 %v375_v13, %v376_v9  ;;  %v263_v17 = vmul.f32 %v376_v9, %v204_v0  ;;  %v269_v27 = vmul.f32 0.8, %v375_v13  ;;  %v270_v28 = vmul.f32 0.6, %v376_v9 }
  0x14   : > { %v210_v6 = vmul.f32 1.442695, %v209_v4  ;;  %v213_v7 = vmul.f32 1.442695, %v212_v5 }
  0x15   : > { %v264_v18 = vmul.f32 %v374_v1, %v240_v14  ;;  %v271_v35 = vsub.f32 %v269_v27, %v270_v28 }
  0x16   : > { %414 = vpow2.f32 %v210_v6 }
  0x17   : > { %416 = vpow2.f32 %v213_v7  ;;  %v265_v23 = vadd.f32 %v264_v18, %v263_v17 }
  0x19   : > { %v267_v31 = vsub.f32 %v265_v23, %v208_v2 }
  0x1c   : > { %v415_v10 = vpop.eup %414 }
  0x1d   : > { %v417_v11 = vpop.eup %416 }
  0x1e   : > { %v215_v12 = vadd.f32 %v417_v11, %v415_v10 }
  0x20   : > { %418 = vrcp.f32 %v215_v12  ;;  %v227_v19 = vand.u32 2147483648, %v215_v12  ;;  %vm221_vm2 = vweird.f32 %v215_v12  ;;  %v225_v21 = vand.u32 2147483647, %v215_v12 }
  0x21   : > { %420 = vlog2.f32 %v215_v12 }
  0x22   : > { %v228_v25 = vor.u32 1.1754944e-38, %v227_v19  ;;  %vm226_vm5 = vcmp.eq.f32.partialorder %v225_v21, 8.507059e+37 }
  0x26   : > { %v419_v15 = vpop.eup %418 }
  0x27   : > { %v217_v16 = vmul.f32 %v419_v15, %v215_v12  ;;  %vm222_vm3 = vweird.f32 %v419_v15  ;;  %v421_v24 = vpop.eup %420 }
  0x28   : > { %vm223_vm4 = vmor %vm221_vm2, %vm222_vm3  ;;  %v231_v30 = vmul.f32 0.6931472, %v421_v24 }
  0x29   : > { %v218_v20 = vsub.f32 1.0, %v217_v16 }
  0x2a   : > { %v268_v39 = vsub.f32 %v267_v31, %v231_v30 }
  0x2b   : > { %v219_v22 = vmul.f32 %v419_v15, %v218_v20 }
  0x2c   : > { %v276_v42 = vmul.f32 %v271_v35, %v268_v39 }
  0x2d   : > { %v220_v26 = vadd.f32 %v419_v15, %v219_v22 }
  0x2f   : > { %v224_v29 = vsel %vm223_vm4, %v419_v15, %v220_v26 }
  0x30   : > { %v229_v32 = vsel %vm226_vm5, %v228_v25, %v224_v29 }
  0x31   : > { %v232_v33 = vmul.f32 %v415_v10, %v229_v32  ;;  %v233_v34 = vmul.f32 %v417_v11, %v229_v32 }
  0x33   : > { %v242_v36 = vmul.f32 %v376_v9, %v232_v33  ;;  %v248_v37 = vmul.f32 %v240_v14, %v233_v34  ;;  %v254_v38 = vmul.f32 %v375_v13, %v232_v33 }
  0x35   : > { %v266_v40 = vadd.f32 %v248_v37, %v242_v36  ;;  %245 = vst [vmem:[%s489_s24] sm:$0xff] %v242_v36 }
  0x36   : > { %378 = vst [vmem:[%s489_s24 + $0x8] sm:$0xff] %v248_v37 }
  0x37   : > { %v272_v41 = vsub.f32 1.0, %v266_v40  ;;  %380 = vst [vmem:[%s489_s24 + $0x10] sm:$0xff] %v254_v38 }
  0x39   : > { %v275_v43 = vsub.f32 0.0, %v272_v41 }
  0x3b   : > { %v277_v44 = vmul.f32 %v276_v42, %v275_v43 }
  0x3d   : > { %384 = vst [vmem:[%s489_s24 + $0x20] sm:$0xff] %v277_v44 }
  0x3e PF: > { %s12_s11 = sadd.s32 1, %s444_s11   ;;  %s508_s9 = smov %s440_s10 }
  0x3f   : > { %p9_p5 = scmp.ge.s32.totalorder %s12_s11, 4   ;;  %s509_s10 = smov %s511_s12 }
  0x41   :  { %11 = sbr.rel (!%p9_p5) target bundleno = 2 (0x2), region = 70 }

</bundles_post_ra>
